<compile_context>
chip_gen: v7x
topology: tpu7x:2x2x1
jax: 0.10.0
libtpu: 0.0.40
codegen_flags: <defaults>
</compile_context>

<pallas_src>
import functools

import jax
import jax.numpy as jnp
from jax.experimental import pallas as pl
from jax.experimental.pallas import tpu as pltpu


def _round_up(x, m):
    return ((x + m - 1) // m) * m


def _composition_kernel(seg_ref, x_ref, w1_ref, b1_ref, w2_ref, b2_ref,
                        out_ref, acc_ref):
    # seg_ref : (1, block_n) int32   segment id per row (-1 => padded row)
    # x_ref   : (block_n, K_pad) f32
    # w1_ref  : (K_pad, H_pad) f32, b1_ref: (1, H_pad)
    # w2_ref  : (H_pad, D_pad) f32, b2_ref: (1, D_pad)
    # out_ref : (M_pad, D_pad) f32  (resident across the reduction axis)
    # acc_ref : (M_pad, H_pad) f32  VMEM accumulator for the segment sums
    step = pl.program_id(0)

    @pl.when(step == 0)
    def _():
        acc_ref[...] = jnp.zeros_like(acc_ref)

    # Linear 1 + exact GELU (matches torch nn.GELU default, erf-based).
    x = x_ref[...]
    h = jnp.dot(x, w1_ref[...], preferred_element_type=jnp.float32) + b1_ref[...]
    inv_sqrt2 = jnp.float32(0.7071067811865476)
    h = 0.5 * h * (1.0 + jax.lax.erf(h * inv_sqrt2))

    # Segment scatter-add for this tile as one-hot matmul:
    #   (M_pad, block_n) @ (block_n, H_pad) -> (M_pad, H_pad)
    seg = seg_ref[...]                                              # (1, block_n)
    m_pad = acc_ref.shape[0]
    bn = seg.shape[1]
    row_ids = jax.lax.broadcasted_iota(jnp.int32, (m_pad, bn), 0)   # (M_pad, bn)
    onehot = (row_ids == seg).astype(jnp.float32)                   # pad ids (-1) never match
    acc_ref[...] += jnp.dot(onehot, h, preferred_element_type=jnp.float32)

    # Finalize on the last reduction step: Linear 2 + L2 normalize.
    @pl.when(step == pl.num_programs(0) - 1)
    def _():
        y = jnp.dot(acc_ref[...], w2_ref[...],
                    preferred_element_type=jnp.float32) + b2_ref[...]
        # torch F.normalize(p=2, dim=1, eps=1e-12): y / max(||y||, eps)
        norm_sq = jnp.sum(y * y, axis=-1, keepdims=True)
        inv = jax.lax.rsqrt(jnp.maximum(norm_sq, jnp.float32(1e-24)))
        out_ref[...] = y * inv


@functools.partial(jax.jit, static_argnames=("num_segments", "block_n"))
def composition_forward(xzy, segment_ids, w1, b1, w2, b2, *,
                        num_segments, block_n=128):
    """w1: (2D, H), w2: (H, D) -- nn.Linear weights pre-transposed to (in, out)."""
    N, K = xzy.shape          # K = 2 * vector_space_dimension
    H = w1.shape[1]
    D = w2.shape[1]
    M = num_segments

    K_pad = _round_up(K, 128)
    H_pad = _round_up(H, 128)
    D_pad = _round_up(D, 128)
    M_pad = _round_up(M, 8)
    N_pad = _round_up(N, block_n)
    n_blocks = N_pad // block_n

    # Zero-pad everything to lane/sublane-dense shapes; padded xzy rows get
    # segment id -1 so the one-hot drops them (GELU(b1) of padded rows must
    # never reach the accumulator).
    x_p = jnp.zeros((N_pad, K_pad), jnp.float32).at[:N, :K].set(
        xzy.astype(jnp.float32))
    seg_p = jnp.full((1, N_pad), -1, jnp.int32).at[0, :N].set(
        segment_ids.astype(jnp.int32))
    w1_p = jnp.zeros((K_pad, H_pad), jnp.float32).at[:K, :H].set(
        w1.astype(jnp.float32))
    b1_p = jnp.zeros((1, H_pad), jnp.float32).at[0, :H].set(
        b1.astype(jnp.float32))
    w2_p = jnp.zeros((H_pad, D_pad), jnp.float32).at[:H, :D].set(
        w2.astype(jnp.float32))
    b2_p = jnp.zeros((1, D_pad), jnp.float32).at[0, :D].set(
        b2.astype(jnp.float32))

    out_padded = pl.pallas_call(
        _composition_kernel,
        out_shape=jax.ShapeDtypeStruct((M_pad, D_pad), jnp.float32),
        grid_spec=pltpu.PrefetchScalarGridSpec(
            num_scalar_prefetch=0,
            grid=(n_blocks,),
            in_specs=[
                pl.BlockSpec((1, block_n), lambda n: (0, n)),        # segment ids
                pl.BlockSpec((block_n, K_pad), lambda n: (n, 0)),    # xzy tile
                pl.BlockSpec((K_pad, H_pad), lambda n: (0, 0)),      # W1 (resident)
                pl.BlockSpec((1, H_pad), lambda n: (0, 0)),          # b1
                pl.BlockSpec((H_pad, D_pad), lambda n: (0, 0)),      # W2 (resident)
                pl.BlockSpec((1, D_pad), lambda n: (0, 0)),          # b2
            ],
            out_specs=pl.BlockSpec((M_pad, D_pad), lambda n: (0, 0)),
            scratch_shapes=[pltpu.VMEM((M_pad, H_pad), jnp.float32)],
        ),
        compiler_params=pltpu.CompilerParams(
            dimension_semantics=("arbitrary",)),   # reduction over N tiles
    )(seg_p, x_p, w1_p, b1_p, w2_p, b2_p)

    return out_padded[:M, :D]


def _reference_forward(xzy, segment_ids, w1, b1, w2, b2, num_segments):
    h = xzy @ w1 + b1
    h = 0.5 * h * (1.0 + jax.lax.erf(h / jnp.sqrt(2.0)))
    seg_sum = jax.ops.segment_sum(h, segment_ids, num_segments=num_segments)
    y = seg_sum @ w2 + b2
    norm = jnp.maximum(jnp.linalg.norm(y, axis=1, keepdims=True), 1e-12)
    return y / norm


if __name__ == "__main__":
    # Configuration (synthetic): vector_space_dimension=32, inner_layer_dimension=64.
    D = 32       # vector_space_dimension (== output_layer_dimension)
    H = 64       # inner_layer_dimension
    N = 256      # number of input rows  -> grid of 2 reduction steps at block_n=128
    M = 16       # number of segments

    key = jax.random.PRNGKey(0)
    k_x, k_w1, k_b1, k_w2, k_b2 = jax.random.split(key, 5)

    # Deterministic parameter init (nn.Linear-style uniform +/- 1/sqrt(fan_in)),
    # stored pre-transposed as (in, out).
    fan1 = 2 * D
    w1 = jax.random.uniform(k_w1, (fan1, H), jnp.float32, -1.0, 1.0) / jnp.sqrt(fan1)
    b1 = jax.random.uniform(k_b1, (H,), jnp.float32, -1.0, 1.0) / jnp.sqrt(fan1)
    fan2 = H
    w2 = jax.random.uniform(k_w2, (fan2, D), jnp.float32, -1.0, 1.0) / jnp.sqrt(fan2)
    b2 = jax.random.uniform(k_b2, (D,), jnp.float32, -1.0, 1.0) / jnp.sqrt(fan2)

    # Inputs: xzy (N, 2D) and valid non-decreasing segment ids starting at 0.
    xzy = jax.random.normal(k_x, (N, 2 * D), jnp.float32)
    segment_ids = jnp.repeat(jnp.arange(M, dtype=jnp.int32), N // M)   # last id = M-1

    out = composition_forward(xzy, segment_ids, w1, b1, w2, b2,
                              num_segments=M, block_n=128)
    out = jax.block_until_ready(out)

    ref = _reference_forward(xzy, segment_ids, w1, b1, w2, b2, M)
    assert out.shape == (M, D)
    assert jnp.allclose(out, ref, atol=1e-5, rtol=1e-5), "mismatch vs reference"
    print("KERNEL_OK")
</pallas_src>

<mosaic_0001>
module attributes {stable_mosaic.version = 11 : i64} {
  func.func @_composition_kernel(%arg0: i32, %arg1: memref<1x128xi32, #tpu.memory_space<vmem>>, %arg2: memref<128x128xf32, #tpu.memory_space<vmem>>, %arg3: memref<128x128xf32, #tpu.memory_space<vmem>>, %arg4: memref<1x128xf32, #tpu.memory_space<vmem>>, %arg5: memref<128x128xf32, #tpu.memory_space<vmem>>, %arg6: memref<1x128xf32, #tpu.memory_space<vmem>>, %arg7: memref<16x128xf32, #tpu.memory_space<vmem>>, %arg8: memref<16x128xf32, #tpu.memory_space<vmem>>) attributes {dimension_semantics = [#tpu.dimension_semantics<arbitrary>], iteration_bounds = array<i64: 2>, scalar_prefetch = 0 : i64, scratch_operands = 1 : i64, tpu.core_type = #tpu.core_type<tc>, window_params = [{transform_indices = @transform_0, window_bounds = array<i64: 1, 128>}, {transform_indices = @transform_1, window_bounds = array<i64: 128, 128>}, {pipeline_mode = #tpu.pipeline_mode<synchronous>, transform_indices = @transform_2, window_bounds = array<i64: 128, 128>}, {pipeline_mode = #tpu.pipeline_mode<synchronous>, transform_indices = @transform_3, window_bounds = array<i64: 1, 128>}, {pipeline_mode = #tpu.pipeline_mode<synchronous>, transform_indices = @transform_4, window_bounds = array<i64: 128, 128>}, {pipeline_mode = #tpu.pipeline_mode<synchronous>, transform_indices = @transform_5, window_bounds = array<i64: 1, 128>}, {pipeline_mode = #tpu.pipeline_mode<synchronous>, transform_indices = @transform_6, window_bounds = array<i64: 16, 128>}]} {
    %c0_i32 = arith.constant 0 : i32
    %0 = arith.cmpi eq, %arg0, %c0_i32 : i32
    %1 = arith.extui %0 : i1 to i32
    %c0_i32_0 = arith.constant 0 : i32
    %2 = arith.cmpi ne, %1, %c0_i32_0 : i32
    scf.if %2 {
      %cst_17 = arith.constant 0.000000e+00 : f32
      %30 = vector.broadcast %cst_17 : f32 to vector<16x128xf32>
      %c0_18 = arith.constant 0 : index
      %c0_19 = arith.constant 0 : index
      %31 = vector.load %arg8[%c0_18, %c0_19] : memref<16x128xf32, #tpu.memory_space<vmem>>, vector<16x128xf32>
      tpu.vector_store %arg8[%c0_18, %c0_19], %30 {strides = array<i32>} : memref<16x128xf32, #tpu.memory_space<vmem>>, vector<16x128xf32>,
    } else {
    }
    %c0 = arith.constant 0 : index
    %c0_1 = arith.constant 0 : index
    %3 = vector.load %arg2[%c0, %c0_1] : memref<128x128xf32, #tpu.memory_space<vmem>>, vector<128x128xf32>
    %c0_2 = arith.constant 0 : index
    %c0_3 = arith.constant 0 : index
    %4 = vector.load %arg3[%c0_2, %c0_3] : memref<128x128xf32, #tpu.memory_space<vmem>>, vector<128x128xf32>
    %cst = arith.constant dense<0.000000e+00> : vector<128x128xf32>
    %5 = tpu.matmul %3, %4, %cst {dimension_numbers = #tpu.dot_dimension_numbers<[1], [0], [0], [1], [0, 0, 1, 1], [], []>} : vector<128x128xf32>, vector<128x128xf32>, vector<128x128xf32> -> vector<128x128xf32>
    %c0_4 = arith.constant 0 : index
    %c0_5 = arith.constant 0 : index
    %6 = vector.load %arg4[%c0_4, %c0_5] : memref<1x128xf32, #tpu.memory_space<vmem>>, vector<1x128xf32>
    %7 = vector.broadcast %6 : vector<1x128xf32> to vector<128x128xf32>
    %8 = arith.addf %5, %7 : vector<128x128xf32>
    %cst_6 = arith.constant 5.000000e-01 : f32
    %9 = vector.broadcast %cst_6 : f32 to vector<128x128xf32>
    %10 = arith.mulf %9, %8 : vector<128x128xf32>
    %cst_7 = arith.constant 0.707106769 : f32
    %11 = vector.broadcast %cst_7 : f32 to vector<128x128xf32>
    %12 = arith.mulf %8, %11 : vector<128x128xf32>
    %13 = math.erf %12 : vector<128x128xf32>
    %cst_8 = arith.constant 1.000000e+00 : f32
    %14 = vector.broadcast %cst_8 : f32 to vector<128x128xf32>
    %15 = arith.addf %14, %13 : vector<128x128xf32>
    %16 = arith.mulf %10, %15 : vector<128x128xf32>
    %c0_9 = arith.constant 0 : index
    %c0_10 = arith.constant 0 : index
    %17 = vector.load %arg1[%c0_9, %c0_10] : memref<1x128xi32, #tpu.memory_space<vmem>>, vector<1x128xi32>
    %18 = tpu.iota {dimensions = array<i32: 0>} : vector<16x128xi32>
    %19 = vector.broadcast %17 : vector<1x128xi32> to vector<16x128xi32>
    %20 = arith.cmpi eq, %18, %19 : vector<16x128xi32>
    %21 = arith.extui %20 : vector<16x128xi1> to vector<16x128xi32>
    %22 = arith.sitofp %21 : vector<16x128xi32> to vector<16x128xf32>
    %c0_11 = arith.constant 0 : index
    %c0_12 = arith.constant 0 : index
    %23 = vector.load %arg8[%c0_11, %c0_12] : memref<16x128xf32, #tpu.memory_space<vmem>>, vector<16x128xf32>
    %cst_13 = arith.constant dense<0.000000e+00> : vector<16x128xf32>
    %24 = tpu.matmul %22, %16, %cst_13 {dimension_numbers = #tpu.dot_dimension_numbers<[1], [0], [0], [1], [0, 0, 1, 1], [], []>} : vector<16x128xf32>, vector<128x128xf32>, vector<16x128xf32> -> vector<16x128xf32>
    %25 = arith.addf %23, %24 : vector<16x128xf32>
    %c0_14 = arith.constant 0 : index
    %c0_15 = arith.constant 0 : index
    %26 = vector.load %arg8[%c0_14, %c0_15] : memref<16x128xf32, #tpu.memory_space<vmem>>, vector<16x128xf32>
    tpu.vector_store %arg8[%c0_14, %c0_15], %25 {strides = array<i32>} : memref<16x128xf32, #tpu.memory_space<vmem>>, vector<16x128xf32>,
    %c1_i32 = arith.constant 1 : i32
    %27 = arith.cmpi eq, %arg0, %c1_i32 : i32
    %28 = arith.extui %27 : i1 to i32
    %c0_i32_16 = arith.constant 0 : i32
    %29 = arith.cmpi ne, %28, %c0_i32_16 : i32
    scf.if %29 {
      %c0_17 = arith.constant 0 : index
      %c0_18 = arith.constant 0 : index
      %30 = vector.load %arg8[%c0_17, %c0_18] : memref<16x128xf32, #tpu.memory_space<vmem>>, vector<16x128xf32>
      %c0_19 = arith.constant 0 : index
      %c0_20 = arith.constant 0 : index
      %31 = vector.load %arg5[%c0_19, %c0_20] : memref<128x128xf32, #tpu.memory_space<vmem>>, vector<128x128xf32>
      %cst_21 = arith.constant dense<0.000000e+00> : vector<16x128xf32>
      %32 = tpu.matmul %30, %31, %cst_21 {dimension_numbers = #tpu.dot_dimension_numbers<[1], [0], [0], [1], [0, 0, 1, 1], [], []>} : vector<16x128xf32>, vector<128x128xf32>, vector<16x128xf32> -> vector<16x128xf32>
      %c0_22 = arith.constant 0 : index
      %c0_23 = arith.constant 0 : index
      %33 = vector.load %arg6[%c0_22, %c0_23] : memref<1x128xf32, #tpu.memory_space<vmem>>, vector<1x128xf32>
      %34 = vector.broadcast %33 : vector<1x128xf32> to vector<16x128xf32>
      %35 = arith.addf %32, %34 : vector<16x128xf32>
      %36 = arith.mulf %35, %35 : vector<16x128xf32>
      %cst_24 = arith.constant dense<0.000000e+00> : vector<16xf32>
      %37 = vector.multi_reduction <add>, %36, %cst_24 [1] : vector<16x128xf32> to vector<16xf32>
      %38 = vector.shape_cast %37 : vector<16xf32> to vector<16x1xf32>
      %cst_25 = arith.constant 1.000000e-24 : f32
      %39 = vector.broadcast %cst_25 : f32 to vector<16x1xf32>
      %40 = arith.maximumf %38, %39 : vector<16x1xf32>
      %41 = math.rsqrt %40 : vector<16x1xf32>
      %42 = vector.broadcast %41 : vector<16x1xf32> to vector<16x128xf32>
      %43 = arith.mulf %35, %42 : vector<16x128xf32>
      %c0_26 = arith.constant 0 : index
      %c0_27 = arith.constant 0 : index
      %44 = vector.load %arg7[%c0_26, %c0_27] : memref<16x128xf32, #tpu.memory_space<vmem>>, vector<16x128xf32>
      tpu.vector_store %arg7[%c0_26, %c0_27], %43 {strides = array<i32>} : memref<16x128xf32, #tpu.memory_space<vmem>>, vector<16x128xf32>,
    } else {
    }
    return
  }
  func.func @transform_0(%arg0: i32) -> (i32, i32) {
    %c0_i32 = arith.constant 0 : i32
    %c0_i32_0 = arith.constant 0 : i32
    return %c0_i32, %arg0 : i32, i32
  }
  func.func @transform_1(%arg0: i32) -> (i32, i32) {
    %c0_i32 = arith.constant 0 : i32
    %c0_i32_0 = arith.constant 0 : i32
    return %arg0, %c0_i32 : i32, i32
  }
  func.func @transform_2(%arg0: i32) -> (i32, i32) {
    %c0_i32 = arith.constant 0 : i32
    %c0_i32_0 = arith.constant 0 : i32
    %c0_i32_1 = arith.constant 0 : i32
    return %c0_i32, %c0_i32_0 : i32, i32
  }
  func.func @transform_3(%arg0: i32) -> (i32, i32) {
    %c0_i32 = arith.constant 0 : i32
    %c0_i32_0 = arith.constant 0 : i32
    %c0_i32_1 = arith.constant 0 : i32
    return %c0_i32, %c0_i32_0 : i32, i32
  }
  func.func @transform_4(%arg0: i32) -> (i32, i32) {
    %c0_i32 = arith.constant 0 : i32
    %c0_i32_0 = arith.constant 0 : i32
    %c0_i32_1 = arith.constant 0 : i32
    return %c0_i32, %c0_i32_0 : i32, i32
  }
  func.func @transform_5(%arg0: i32) -> (i32, i32) {
    %c0_i32 = arith.constant 0 : i32
    %c0_i32_0 = arith.constant 0 : i32
    %c0_i32_1 = arith.constant 0 : i32
    return %c0_i32, %c0_i32_0 : i32, i32
  }
  func.func @transform_6(%arg0: i32) -> (i32, i32) {
    %c0_i32 = arith.constant 0 : i32
    %c0_i32_0 = arith.constant 0 : i32
    %c0_i32_1 = arith.constant 0 : i32
    return %c0_i32, %c0_i32_0 : i32, i32
  }
}

</mosaic_0001>

<bundles_post_ra>
// kernel: composition_forward.1
= control target key start
LH: loop header
LB: loop body
LE: loop exit
PB: predicated region body
PF: predicated region fallthrough
CT: control target
= control target key end

     0   :  { %11 = vsyncpa [#allocation4], 0  ;;  %s1236_s21 = smov 0   ;;  %s1449_s0 = inlined_call_operand.vmem [shape: s32[1,256], index: 0, kind: input, shape index: {}]   ;;  %s1450_s1 = inlined_call_operand.vmem [shape: f32[256,128], index: 1, kind: input, shape index: {}]   ;;  %s1451_s2 = inlined_call_operand.vmem [shape: f32[128,128], index: 2, kind: input, shape index: {}]   ;;  %s1452_s3 = inlined_call_operand.vmem [shape: f32[1,128], index: 3, kind: input, shape index: {}]   ;;  %s1453_s4 = inlined_call_operand.vmem [shape: f32[128,128], index: 4, kind: input, shape index: {}]   ;;  %s1454_s5 = inlined_call_operand.vmem [shape: f32[1,128], index: 5, kind: input, shape index: {}]   ;;  %s1455_s6 = inlined_call_operand.hbm [shape: f32[16,128], index: 6, kind: output, shape index: {}]  }
   0x1 LB: > { %s1242_s22 = sadd.s32 4294967295, %s1194_s21   ;;  %p797_p0 = scmp.ge.s32.totalorder %s1194_s21, 1  ;;  %s1194_s21 = sphi %s1236_s21, %s17_s21  }
   0x2   : > { %p217_p1 = scmp.lt.s32.totalorder %s1194_s21, 3 }
   0x4   : > { %p218_p2 = pnand %p797_p0, %p217_p1 }
   0x5   : > { %p245_p3 = scmp.lt.s32.totalorder (!%p218_p2), %s1242_s22, 1  ;;  %s798_s23 = sshll.u32 (!%p218_p2), %s1242_s22, 4 }
   0x6   : > { %221 = sbr.rel (%p218_p2) target bundleno = 951 (0x3b7), region = 44  ;;  %p249_p4 = scmp.lt.s32.totalorder (!%p218_p2), %s798_s23, 31 }
   0x7   : > { %p800_p5 = scmp.ne.s32.totalorder (!%p218_p2), %s1242_s22, 0 }
   0xd   : > { %s1249_s24 = scalar_select %p245_p3, %s1242_s22, 1 }
   0xe   : > { %s1457_s23 = smov (!%p249_p4, %s798_s23), 31  ;;  %257 = sbr.rel (%p800_p5) target bundleno = 21 (0x15), region = 48 }
   0xf   : > { %s247_s27 = scalar_lea.vmem %s1449_s0, %s1249_s24  ;;  %s799_s28 = sshll.u32 %s1457_s23, 3  ;;  %v1196_v0 = vmov (!%p800_p5), 0.0  }
  0x10   : > { %s1258_s7 = scalar_lea.vmem %s1450_s1, %s799_s28  ;;  %258 = vst [vmem:[#allocation2] sm:$0xff] (!%p800_p5), %v1196_v0  ;;  %259 = vst [vmem:[#allocation2 + $0x8] sm:$0xff] (!%p800_p5), %v1196_v0 }
  0x15 PF: > { %v276_v1 = vld [vmem:[%s1451_s2] sm:$0xff]  ;;  %v277_v2 = vld [vmem:[%s1451_s2 + $0x8] sm:$0xff]  ;;  %v278_v3 = vld [vmem:[%s1451_s2 + $0x10] sm:$0xff]  ;;  %v525_v41 = vlaneseq  ;;  %v1197_v45 = vmov 1.0   ;;  %p807_p6 = scmp.ne.s32.totalorder %s1242_s22, 1 }
  0x16   : > { %v1007_v4 = vpack.c.bf16 %v277_v2, %v276_v1  ;;  %v279_v5 = vld [vmem:[%s1451_s2 + $0x18] sm:$0xff]  ;;  %v280_v7 = vld [vmem:[%s1451_s2 + $0x20] sm:$0xff]  ;;  %v281_v8 = vld [vmem:[%s1451_s2 + $0x28] sm:$0xff] }
  0x17   : > { %v1011_v6 = vpack.c.bf16 %v279_v5, %v278_v3  ;;  %v1015_v9 = vpack.c.bf16 %v281_v8, %v280_v7  ;;  %v260_v10 = vld [vmem:[%s1258_s7] sm:$0xff]  ;;  %v282_v11 = vld [vmem:[%s1451_s2 + $0x30] sm:$0xff]  ;;  %v283_v12 = vld [vmem:[%s1451_s2 + $0x38] sm:$0xff]  ;;  %v526_v42 = vshrl.u32 %v525_v41, 7 }
  0x18   : > { %1008 = vmatprep.subr.bf16.mxu0 %v1007_v4  ;;  %913 = vmatprep.mubr.f32.mxu0 %v260_v10  ;;  %v1019_v13 = vpack.c.bf16 %v283_v12, %v282_v11  ;;  %v284_v14 = vld [vmem:[%s1451_s2 + $0x40] sm:$0xff]  ;;  %v285_v15 = vld [vmem:[%s1451_s2 + $0x48] sm:$0xff]  ;;  %v286_v17 = vld [vmem:[%s1451_s2 + $0x50] sm:$0xff] }
  0x19   : > { %1010 = vmatpush3.bf16.msra.mxu0 %v1007_v4  ;;  %v1023_v16 = vpack.c.bf16 %v285_v15, %v284_v14  ;;  %v287_v18 = vld [vmem:[%s1451_s2 + $0x58] sm:$0xff]  ;;  %v288_v20 = vld [vmem:[%s1451_s2 + $0x60] sm:$0xff]  ;;  %v289_v21 = vld [vmem:[%s1451_s2 + $0x68] sm:$0xff]  ;;  %v1332_v44 = vadd.s32 8, %v526_v42 }
  0x1a   : > { %1012 = vmatprep.subr.bf16.mxu0 %v1011_v6  ;;  %v1027_v19 = vpack.c.bf16 %v287_v18, %v286_v17  ;;  %v1031_v22 = vpack.c.bf16 %v289_v21, %v288_v20  ;;  %v290_v23 = vld [vmem:[%s1451_s2 + $0x70] sm:$0xff]  ;;  %v291_v24 = vld [vmem:[%s1451_s2 + $0x78] sm:$0xff]  ;;  %v261_v26 = vld [vmem:[%s1258_s7 + $0x8] sm:$0xff] }
  0x1b   : > { %v1035_v25 = vpack.c.bf16 %v291_v24, %v290_v23  ;;  %v262_v27 = vld [vmem:[%s1258_s7 + $0x10] sm:$0xff]  ;;  %v263_v28 = vld [vmem:[%s1258_s7 + $0x18] sm:$0xff]  ;;  %v264_v29 = vld [vmem:[%s1258_s7 + $0x20] sm:$0xff] }
  0x1c   : > { %v265_v30 = vld [vmem:[%s1258_s7 + $0x28] sm:$0xff]  ;;  %v266_v31 = vld [vmem:[%s1258_s7 + $0x30] sm:$0xff]  ;;  %v267_v32 = vld [vmem:[%s1258_s7 + $0x38] sm:$0xff] }
  0x1d   : > { %1014 = vmatpush3.bf16.msra.mxu0 %v1011_v6  ;;  %v268_v33 = vld [vmem:[%s1258_s7 + $0x40] sm:$0xff]  ;;  %v269_v34 = vld [vmem:[%s1258_s7 + $0x48] sm:$0xff]  ;;  %v270_v35 = vld [vmem:[%s1258_s7 + $0x50] sm:$0xff] }
  0x1e   : > { %1016 = vmatprep.subr.bf16.mxu0 %v1015_v9  ;;  %v271_v36 = vld [vmem:[%s1258_s7 + $0x58] sm:$0xff]  ;;  %v272_v37 = vld [vmem:[%s1258_s7 + $0x60] sm:$0xff]  ;;  %v273_v38 = vld [vmem:[%s1258_s7 + $0x68] sm:$0xff] }
  0x1f   : > { %v274_v39 = vld [vmem:[%s1258_s7 + $0x70] sm:$0xff]  ;;  %v275_v40 = vld [vmem:[%s1258_s7 + $0x78] sm:$0xff]  ;;  %v1330_v43 = vld [vmem:[%s247_s27] ss:$0 sm:$0xff] }
  0x20   : > { %vm532_vm0 = vcmp.eq.s32.totalorder %v526_v42, %v1330_v43  ;;  %vm533_vm1 = vcmp.eq.s32.totalorder %v1332_v44, %v1330_v43  ;;  %v1341_v46 = vld [vmem:[%s1452_s3] ss:$0 sm:$0xff]  ;;  %v626_v43 = vld [vmem:[%s1453_s4 + $0x8] sm:$0xff] (!%p807_p6)  ;;  %v627_v44 = vld [vmem:[%s1453_s4 + $0x10] sm:$0xff] (!%p807_p6) }
  0x21   : > { %1018 = vmatpush3.bf16.msra.mxu0 %v1015_v9  ;;  %969 = vmatprep.mubr.msk.f32.mxu1 %vm532_vm0, %v1197_v45 }
  0x22   : > { %1020 = vmatprep.subr.bf16.mxu0 %v1019_v13 }
  0x25   : > { %1022 = vmatpush3.bf16.msra.mxu0 %v1019_v13 }
  0x26   : > { %1024 = vmatprep.subr.bf16.mxu0 %v1023_v16 }
  0x29   : > { %1026 = vmatpush3.bf16.msra.mxu0 %v1023_v16 }
  0x2a   : > { %1028 = vmatprep.subr.bf16.mxu0 %v1027_v19 }
  0x2d   : > { %1030 = vmatpush3.bf16.msra.mxu0 %v1027_v19 }
  0x2e   : > { %1032 = vmatprep.subr.bf16.mxu0 %v1031_v22 }
  0x31   : > { %1034 = vmatpush3.bf16.msra.mxu0 %v1031_v22 }
  0x32   : > { %1036 = vmatprep.subr.bf16.mxu0 %v1035_v25 }
  0x35   : > { %1038 = vmatpush3.bf16.msra.mxu0 %v1035_v25 }
  0x38   : > { %914 = vmatmul.mubr.f32.vlgmr.msra.gmra.mrb[0].mxu0 %v261_v26 }
  0x39   : > { %916 = vmatprep.mubr.f32.mxu0 %v262_v27 }
  0x3c   : > { %917 = vmatmul.mubr.f32.gmra.mrb[2].mxu0 %v263_v28 }
  0x3d   : > { %919 = vmatprep.mubr.f32.mxu0 %v264_v29 }
  0x40   : > { %920 = vmatmul.mubr.f32.gmra.mrb[4].mxu0 %v265_v30 }
  0x41   : > { %922 = vmatprep.mubr.f32.mxu0 %v266_v31 }
  0x44   : > { %923 = vmatmul.mubr.f32.gmra.mrb[6].mxu0 %v267_v32 }
  0x45   : > { %925 = vmatprep.mubr.f32.mxu0 %v268_v33 }
  0x48   : > { %926 = vmatmul.mubr.f32.gmra.mrb[8].mxu0 %v269_v34 }
  0x49   : > { %928 = vmatprep.mubr.f32.mxu0 %v270_v35 }
  0x4c   : > { %929 = vmatmul.mubr.f32.gmra.mrb[10].mxu0 %v271_v36 }
  0x4d   : > { %931 = vmatprep.mubr.f32.mxu0 %v272_v37 }
  0x50   : > { %932 = vmatmul.mubr.f32.gmra.mrb[12].mxu0 %v273_v38 }
  0x51   : > { %934 = vmatprep.mubr.f32.mxu0 %v274_v39 }
  0x54   : > { %935 = vmatmul.mubr.f32.gmra.mrb[14].mxu0 %v275_v40 }
 0x10b   : > { %v915_v47 = vpop.f32.mrb[0].mxu0 }
 0x10c   : > { %v371_v48 = vadd.f32 %v915_v47, %v1341_v46  ;;  %v365_v49 = vpop.f32.mrb[1].mxu0 }
 0x10d   : > { %v366_v50 = vadd.f32 %v1341_v46, %v365_v49 }
 0x10e   : > { %v461_v51 = vmul.f32 0.70710677, %v371_v48  ;;  %v445_v8 = vmul.f32 0.5, %v371_v48 }
 0x10f   : > { %v460_v52 = vmul.f32 0.70710677, %v366_v50  ;;  %v918_v53 = vpop.f32.mrb[2].mxu0  ;;  %v444_v12 = vmul.f32 0.5, %v366_v50 }
 0x110   : > { %1122 = verf.f32 %v461_v51  ;;  %v381_v54 = vadd.f32 %v918_v53, %v1341_v46  ;;  %v375_v55 = vpop.f32.mrb[3].mxu0 }
 0x111   : > { %1124 = verf.f32 %v460_v52  ;;  %v376_v56 = vadd.f32 %v1341_v46, %v375_v55 }
 0x112   : > { %v463_v57 = vmul.f32 0.70710677, %v381_v54  ;;  %v447_v22 = vmul.f32 0.5, %v381_v54 }
 0x113   : > { %v462_v58 = vmul.f32 0.70710677, %v376_v56  ;;  %v921_v59 = vpop.f32.mrb[4].mxu0  ;;  %v446_v24 = vmul.f32 0.5, %v376_v56 }
 0x114   : > { %1126 = verf.f32 %v463_v57  ;;  %v391_v60 = vadd.f32 %v921_v59, %v1341_v46  ;;  %v385_v61 = vpop.f32.mrb[5].mxu0 }
 0x115   : > { %1128 = verf.f32 %v462_v58  ;;  %v386_v62 = vadd.f32 %v1341_v46, %v385_v61 }
 0x116   : > { %v465_v63 = vmul.f32 0.70710677, %v391_v60  ;;  %v449_v37 = vmul.f32 0.5, %v391_v60 }
 0x117   : > { %v464_v0 = vmul.f32 0.70710677, %v386_v62  ;;  %v924_v1 = vpop.f32.mrb[6].mxu0  ;;  %v448_v39 = vmul.f32 0.5, %v386_v62 }
 0x118   : > { %1130 = verf.f32 %v465_v63  ;;  %v401_v2 = vadd.f32 %v924_v1, %v1341_v46  ;;  %v395_v3 = vpop.f32.mrb[7].mxu0 }
 0x119   : > { %1132 = verf.f32 %v464_v0  ;;  %v396_v4 = vadd.f32 %v1341_v46, %v395_v3 }
 0x11a   : > { %v1123_v5 = vpop.eup %1122  ;;  %v467_v6 = vmul.f32 0.70710677, %v401_v2  ;;  %v451_v56 = vmul.f32 0.5, %v401_v2 }
 0x11b   : > { %v1125_v7 = vpop.eup %1124  ;;  %v466_v9 = vmul.f32 0.70710677, %v396_v4  ;;  %v927_v10 = vpop.f32.mrb[8].mxu0  ;;  %v493_v11 = vadd.f32 1.0, %v1123_v5  ;;  %v450_v58 = vmul.f32 0.5, %v396_v4 }
 0x11c   : > { %1134 = verf.f32 %v467_v6  ;;  %v1352_v13 = vadd.f32 %v927_v10, %v1341_v46  ;;  %v405_v14 = vpop.f32.mrb[9].mxu0  ;;  %v492_v15 = vadd.f32 1.0, %v1125_v7 }
 0x11d   : > { %1136 = verf.f32 %v466_v9  ;;  %v1355_v16 = vadd.f32 %v1341_v46, %v405_v14  ;;  %v509_v17 = vmul.f32 %v493_v11, %v445_v8 }
 0x11e   : > { %v1127_v18 = vpop.eup %1126  ;;  %v469_v19 = vmul.f32 0.70710677, %v1352_v13  ;;  %v508_v20 = vmul.f32 %v492_v15, %v444_v12  ;;  %v453_v4 = vmul.f32 0.5, %v1352_v13 }
 0x11f   : > { %v1129_v21 = vpop.eup %1128  ;;  %v495_v23 = vadd.f32 1.0, %v1127_v18  ;;  %v468_v25 = vmul.f32 0.70710677, %v1355_v16  ;;  %v930_v26 = vpop.f32.mrb[10].mxu0  ;;  %v452_v10 = vmul.f32 0.5, %v1355_v16 }
 0x120   : > { %v494_v27 = vadd.f32 1.0, %v1129_v21  ;;  %1138 = verf.f32 %v469_v19  ;;  %v421_v28 = vadd.f32 %v930_v26, %v1341_v46  ;;  %v415_v29 = vpop.f32.mrb[11].mxu0  ;;  %v1039_v30 = vpack.c.bf16 %v509_v17, %v508_v20 }
 0x121   : > { %v511_v31 = vmul.f32 %v495_v23, %v447_v22  ;;  %1140 = verf.f32 %v468_v25  ;;  %v416_v32 = vadd.f32 %v1341_v46, %v415_v29 }
 0x122   : > { %v1131_v33 = vpop.eup %1130  ;;  %v510_v34 = vmul.f32 %v494_v27, %v446_v24  ;;  %v471_v35 = vmul.f32 0.70710677, %v421_v28  ;;  %1040 = vmatprep.subr.bf16.mxu1 %v1039_v30  ;;  %v455_v18 = vmul.f32 0.5, %v421_v28 }
 0x123   : > { %v1133_v36 = vpop.eup %1132  ;;  %v497_v38 = vadd.f32 1.0, %v1131_v33  ;;  %v470_v40 = vmul.f32 0.70710677, %v416_v32  ;;  %v933_v41 = vpop.f32.mrb[12].mxu0  ;;  %1042 = vmatpush3.bf16.msra.mxu1 %v1039_v30  ;;  %v454_v20 = vmul.f32 0.5, %v416_v32 }
 0x124   : > { %v496_v42 = vadd.f32 1.0, %v1133_v36  ;;  %1142 = verf.f32 %v471_v35  ;;  %v431_v47 = vadd.f32 %v933_v41, %v1341_v46  ;;  %v425_v48 = vpop.f32.mrb[13].mxu0  ;;  %v1043_v49 = vpack.c.bf16 %v511_v31, %v510_v34 }
 0x125   : > { %v513_v50 = vmul.f32 %v497_v38, %v449_v37  ;;  %1144 = verf.f32 %v470_v40  ;;  %v426_v51 = vadd.f32 %v1341_v46, %v425_v48 }
 0x126   : > { %v1135_v52 = vpop.eup %1134  ;;  %v512_v53 = vmul.f32 %v496_v42, %v448_v39  ;;  %v473_v54 = vmul.f32 0.70710677, %v431_v47  ;;  %1044 = vmatprep.subr.bf16.mxu1 %v1043_v49  ;;  %v457_v25 = vmul.f32 0.5, %v431_v47  ;;  %v539_v42 = vld [vmem:[#allocation2 + $0x8] sm:$0xff]  ;;  %v538_v47 = vld [vmem:[#allocation2] sm:$0xff] }
 0x127   : > { %v1137_v55 = vpop.eup %1136  ;;  %v499_v57 = vadd.f32 1.0, %v1135_v52  ;;  %v472_v59 = vmul.f32 0.70710677, %v426_v51  ;;  %v936_v60 = vpop.f32.mrb[14].mxu0  ;;  %1046 = vmatpush3.bf16.msra.mxu1 %v1043_v49  ;;  %v456_v27 = vmul.f32 0.5, %v426_v51  ;;  %v625_v52 = vld [vmem:[%s1453_s4] sm:$0xff] (!%p807_p6) }
 0x128   : > { %v498_v61 = vadd.f32 1.0, %v1137_v55  ;;  %1146 = verf.f32 %v473_v54  ;;  %v441_v62 = vadd.f32 %v936_v60, %v1341_v46  ;;  %v435_v63 = vpop.f32.mrb[15].mxu0  ;;  %v1047_v0 = vpack.c.bf16 %v513_v50, %v512_v53  ;;  %v628_v53 = vld [vmem:[%s1453_s4 + $0x18] sm:$0xff] (!%p807_p6)  ;;  %v629_v55 = vld [vmem:[%s1453_s4 + $0x20] sm:$0xff] (!%p807_p6) }
 0x129   : > { %v515_v1 = vmul.f32 %v499_v57, %v451_v56  ;;  %1148 = verf.f32 %v472_v59  ;;  %v436_v3 = vadd.f32 %v1341_v46, %v435_v63  ;;  %v1075_v54 = vpack.c.bf16 (!%p807_p6), %v628_v53, %v627_v44  ;;  %v630_v56 = vld [vmem:[%s1453_s4 + $0x28] sm:$0xff] (!%p807_p6)  ;;  %v631_v59 = vld [vmem:[%s1453_s4 + $0x30] sm:$0xff] (!%p807_p6)  ;;  %v632_v60 = vld [vmem:[%s1453_s4 + $0x38] sm:$0xff] (!%p807_p6) }
 0x12a   : > { %v1139_v5 = vpop.eup %1138  ;;  %v514_v6 = vmul.f32 %v498_v61, %v450_v58  ;;  %v475_v7 = vmul.f32 0.70710677, %v441_v62  ;;  %1048 = vmatprep.subr.bf16.mxu1 %v1047_v0  ;;  %v459_v35 = vmul.f32 0.5, %v441_v62  ;;  %v1079_v57 = vpack.c.bf16 (!%p807_p6), %v630_v56, %v629_v55  ;;  %v633_v62 = vld [vmem:[%s1453_s4 + $0x40] sm:$0xff] (!%p807_p6)  ;;  %v634_v63 = vld [vmem:[%s1453_s4 + $0x48] sm:$0xff] (!%p807_p6) }
 0x12b   : > { %v1141_v2 = vpop.eup %1140  ;;  %v501_v8 = vadd.f32 1.0, %v1139_v5  ;;  %v474_v9 = vmul.f32 0.70710677, %v436_v3  ;;  %1050 = vmatpush3.bf16.msra.mxu1 %v1047_v0  ;;  %v458_v36 = vmul.f32 0.5, %v436_v3  ;;  %v1083_v61 = vpack.c.bf16 (!%p807_p6), %v632_v60, %v631_v59  ;;  %v636_v3 = vld [vmem:[%s1453_s4 + $0x58] sm:$0xff] (!%p807_p6) }
 0x12c   : > { %v500_v11 = vadd.f32 1.0, %v1141_v2  ;;  %1150 = verf.f32 %v475_v7  ;;  %v1051_v12 = vpack.c.bf16 %v515_v1, %v514_v6  ;;  %v1087_v0 = vpack.c.bf16 (!%p807_p6), %v634_v63, %v633_v62  ;;  %v635_v1 = vld [vmem:[%s1453_s4 + $0x50] sm:$0xff] (!%p807_p6)  ;;  %v637_v6 = vld [vmem:[%s1453_s4 + $0x60] sm:$0xff] (!%p807_p6)  ;;  %v638_v7 = vld [vmem:[%s1453_s4 + $0x68] sm:$0xff] (!%p807_p6) }
 0x12d   : > { %v517_v14 = vmul.f32 %v501_v8, %v453_v4  ;;  %1152 = verf.f32 %v474_v9  ;;  %v1091_v5 = vpack.c.bf16 (!%p807_p6), %v636_v3, %v635_v1  ;;  %v1095_v2 = vpack.c.bf16 (!%p807_p6), %v638_v7, %v637_v6  ;;  %v639_v4 = vld [vmem:[%s1453_s4 + $0x70] sm:$0xff] (!%p807_p6)  ;;  %v640_v8 = vld [vmem:[%s1453_s4 + $0x78] sm:$0xff] (!%p807_p6) }
 0x12e   : > { %v1143_v15 = vpop.eup %1142  ;;  %v516_v17 = vmul.f32 %v500_v11, %v452_v10  ;;  %1052 = vmatprep.subr.bf16.mxu1 %v1051_v12  ;;  %v1099_v9 = vpack.c.bf16 (!%p807_p6), %v640_v8, %v639_v4  ;;  %v808_v11 = vld [vmem:[%s1454_s5] ss:$0 sm:$0xff] (!%p807_p6) }
 0x12f   : > { %v1145_v46 = vpop.eup %1144  ;;  %v503_v19 = vadd.f32 1.0, %v1143_v15  ;;  %1054 = vmatpush3.bf16.msra.mxu1 %v1051_v12 }
 0x130   : > { %v502_v21 = vadd.f32 1.0, %v1145_v46  ;;  %v1055_v13 = vpack.c.bf16 %v517_v14, %v516_v17 }
 0x131   : > { %v519_v22 = vmul.f32 %v503_v19, %v455_v18 }
 0x132   : > { %v1147_v23 = vpop.eup %1146  ;;  %v518_v24 = vmul.f32 %v502_v21, %v454_v20  ;;  %1056 = vmatprep.subr.bf16.mxu1 %v1055_v13 }
 0x133   : > { %v1149_v16 = vpop.eup %1148  ;;  %v505_v26 = vadd.f32 1.0, %v1147_v23  ;;  %1058 = vmatpush3.bf16.msra.mxu1 %v1055_v13 }
 0x134   : > { %v504_v29 = vadd.f32 1.0, %v1149_v16  ;;  %v1059_v30 = vpack.c.bf16 %v519_v22, %v518_v24 }
 0x135   : > { %v521_v31 = vmul.f32 %v505_v26, %v457_v25 }
 0x136   : > { %v1151_v33 = vpop.eup %1150  ;;  %v520_v34 = vmul.f32 %v504_v29, %v456_v27  ;;  %1060 = vmatprep.subr.bf16.mxu1 %v1059_v30 }
 0x137   : > { %v1153_v28 = vpop.eup %1152  ;;  %v507_v32 = vadd.f32 1.0, %v1151_v33  ;;  %1062 = vmatpush3.bf16.msra.mxu1 %v1059_v30 }
 0x138   : > { %v506_v37 = vadd.f32 1.0, %v1153_v28  ;;  %v1063_v38 = vpack.c.bf16 %v521_v31, %v520_v34 }
 0x139   : > { %v523_v39 = vmul.f32 %v507_v32, %v459_v35 }
 0x13a   : > { %v522_v40 = vmul.f32 %v506_v37, %v458_v36  ;;  %1064 = vmatprep.subr.bf16.mxu1 %v1063_v38 }
 0x13b   : > { %1066 = vmatpush3.bf16.msra.mxu1 %v1063_v38 }
 0x13c   : > { %v1067_v41 = vpack.c.bf16 %v523_v39, %v522_v40 }
 0x13e   : > { %1068 = vmatprep.subr.bf16.mxu1 %v1067_v41 }
 0x13f   : > { %1070 = vmatpush3.bf16.msra.mxu1 %v1067_v41 }
 0x142   : > { %970 = vmatmul.mubr.msk.f32.vlgmr.msra.gmra.mrb[0].mxu1 %vm533_vm1, %v1197_v45  ;;  %v1071_v45 = vpack.c.bf16 (!%p807_p6), %v626_v43, %v625_v52 }
 0x144   : > { %1072 = vmatprep.subr.bf16.mxu0 (!%p807_p6), %v1071_v45 }
 0x145   : > { %1074 = vmatpush3.bf16.msra.mxu0 (!%p807_p6), %v1071_v45 }
 0x146   : > { %1076 = vmatprep.subr.bf16.mxu0 (!%p807_p6), %v1075_v54 }
 0x149   : > { %1078 = vmatpush3.bf16.msra.mxu0 (!%p807_p6), %v1075_v54 }
 0x14a   : > { %1080 = vmatprep.subr.bf16.mxu0 (!%p807_p6), %v1079_v57 }
 0x14d   : > { %1082 = vmatpush3.bf16.msra.mxu0 (!%p807_p6), %v1079_v57 }
 0x14e   : > { %1084 = vmatprep.subr.bf16.mxu0 (!%p807_p6), %v1083_v61 }
 0x151   : > { %1086 = vmatpush3.bf16.msra.mxu0 (!%p807_p6), %v1083_v61 }
 0x152   : > { %1088 = vmatprep.subr.bf16.mxu0 (!%p807_p6), %v1087_v0 }
 0x155   : > { %1090 = vmatpush3.bf16.msra.mxu0 (!%p807_p6), %v1087_v0 }
 0x156   : > { %1092 = vmatprep.subr.bf16.mxu0 (!%p807_p6), %v1091_v5 }
 0x159   : > { %1094 = vmatpush3.bf16.msra.mxu0 (!%p807_p6), %v1091_v5 }
 0x15a   : > { %1096 = vmatprep.subr.bf16.mxu0 (!%p807_p6), %v1095_v2 }
 0x15d   : > { %1098 = vmatpush3.bf16.msra.mxu0 (!%p807_p6), %v1095_v2 }
 0x15e   : > { %1100 = vmatprep.subr.bf16.mxu0 (!%p807_p6), %v1099_v9 }
 0x161   : > { %1102 = vmatpush3.bf16.msra.mxu0 (!%p807_p6), %v1099_v9 }
 0x213   : > { %622 = sbr.rel (%p807_p6) target bundleno = 925 (0x39d), region = 52 }
 0x215   : > { %v971_v48 = vpop.f32.mrb[0].mxu1 }
 0x216   : > { %v616_v49 = vadd.f32 %v971_v48, %v539_v42  ;;  %v606_v50 = vpop.f32.mrb[1].mxu1 }
 0x217   : > { %v615_v51 = vadd.f32 %v606_v50, %v538_v47 }
 0x218   : > { %618 = vst [vmem:[#allocation2 + $0x8] sm:$0xff] %v616_v49 }
 0x219   : > { %617 = vst [vmem:[#allocation2] sm:$0xff] %v615_v51 }
 0x21f   : > { %v624_v10 = vld [vmem:[#allocation2 + $0x8] sm:$0xff] }
 0x220   : > { %v623_v58 = vld [vmem:[#allocation2] sm:$0xff] }
 0x221   : > { %1004 = vmatprep.mubr.f32.mxu0 %v623_v58 }
 0x222   : > { %1005 = vmatmul.mubr.f32.vlgmr.msra.gmra.mrb[0].mxu0 %v624_v10 }
 0x2f5   : > { %v1006_v12 = vpop.f32.mrb[0].mxu0 }
 0x2f6   : > { %v714_v14 = vpop.f32.mrb[1].mxu0  ;;  %v720_v17 = vadd.f32 %v1006_v12, %v808_v11 }
 0x2f7   : > { %v715_v15 = vadd.f32 %v808_v11, %v714_v14 }
 0x2f8   : > { %v724_v18 = vmul.f32 %v720_v17, %v720_v17 }
 0x2f9   : > { %v723_v46 = vmul.f32 %v715_v15, %v715_v15 }
 0x2fb   : > { %725 = vadd.xlane.f32.xlu0 %v723_v46 }
 0x2ff   : > { %727 = vadd.xlane.f32.xlu0 %v724_v18 }
 0x388   : > { %v726_v19 = vpop.xlane.xlu0 %725 }
 0x389   : > { %v729_v20 = vmax.f32 %v726_v19, 1e-24 }
 0x38b   : > { %1154 = vrsqrt.f32 %v729_v20 }
 0x38c   : > { %v728_v21 = vpop.xlane.xlu0 %727 }
 0x38d   : > { %v730_v13 = vmax.f32 %v728_v21, 1e-24 }
 0x38f   : > { %1156 = vrsqrt.f32 %v730_v13 }
 0x395   : > { %v1155_v22 = vpop.eup %1154 }
 0x396   : > { %v733_v23 = vmul.f32 %v1155_v22, %v715_v15 }
 0x398   : > { %735 = vst [vmem:[#allocation3] sm:$0xff] %v733_v23 }
 0x399   : > { %v1157_v24 = vpop.eup %1156 }
 0x39a   : > { %v734_v16 = vmul.f32 %v1157_v24, %v720_v17 }
 0x39c   : > { %736 = vst [vmem:[#allocation3 + $0x8] sm:$0xff] %v734_v16 }
 0x39d PF: > { %p1107_p7 = scmp.eq.s32.totalorder %s1242_s22, 1  ;;  %s1198_s15 = smov [#allocation3]  }
 0x39e   : > { %s743_s16 = sshll.u32 %s1198_s15, 4  ;;  %s744_s16 = int_to_ptr.vmem [resolvable:$true] %s743_s16 }
 0x39f   : > { %s1158_s17 = scalar_lea.vmem %s744_s16, 256  ;;  %p1165_p11 = scmp.lt.s32.totalorder %s744_s16, %s744_s16 }
 0x3a0   : > { %p1159_p8 = scmp.ne.s32.totalorder %s744_s16, %s1158_s17  ;;  %p1166_p12 = scmp.lt.s32.totalorder %s1158_s17, %s1158_s17 }
 0x3a2   : > { %p1160_p9 = pnand %p1159_p8, %p1107_p7  ;;  %p1167_p13 = por %p1166_p12, %p1165_p11 }
 0x3a4   : > { %p1161_p10 = pneg %p1160_p9 }
 0x3a6   : > { %p1168_p0 = pnand %p1167_p13, %p1161_p10 }
 0x3a8   : > { %1171 = shalt.err (!%p1168_p0)
}
 0x3a9   : > { %s1172_s20 = scalar_lea.hbm %s1455_s6, 256 }
 0x3aa   : > { %p1173_p1 = scmp.ne.s32.totalorder %s1455_s6, %s1172_s20  ;;  %p1178_p4 = scmp.lt.u32.totalorder %s1172_s20, %s1455_s6 }
 0x3ac   : > { %p1174_p2 = pnand %p1173_p1, %p1107_p7 }
 0x3ae   : > { %p1175_p3 = pneg %p1174_p2 }
 0x3b0   : > { %p1180_p5 = pnand %p1178_p4, %p1175_p3 }
 0x3b2   : > { %1183 = shalt.err (!%p1180_p5)
}
 0x3b3   : > { %s1199_s24 = smov 128   ;;  %s1200_s27 = smov 8  }
 0x3b4   : > { %1104 = dma.vmem_to_hbm [thread:$0]  (%p1107_p7), %s744_s16, 256, %s1455_s6, [#allocation4], %s1199_s24, %s1199_s24, %s1200_s27  }
 0x3b5   : > { %1189 = dma.done.wait (%p1107_p7), [#allocation4], 256  }
 0x3b6   : > { %1191 = vsyncadd (%p1107_p7), [#allocation4], 4294967040 }
 0x3b7 PF: > { %s17_s21 = sadd.s32 1, %s1194_s21  }
 0x3b8   : > { %p14_p6 = scmp.ge.s32.totalorder %s17_s21, 4  }
 0x3ba   :  { %16 = sbr.rel (!%p14_p6) target bundleno = 1 (0x1), region = 82 }
 0x3c1   :  { %759 = vsyncpa [#allocation4], 1 }
 0x3c2   :  { %761 = vsyncpa [#allocation4 + $0x1], 1 }

</bundles_post_ra>
